<compile_context>
chip_gen: v7x
topology: tpu7x:2x2x1
jax: 0.10.0
libtpu: 0.0.40
codegen_flags: <defaults>
</compile_context>

<pallas_src>
import functools

import jax
import jax.numpy as jnp
from jax.experimental import pallas as pl
from jax.experimental.pallas import tpu as pltpu

_LANE = 128
_SMALL_HW_FALLBACK = 256      # below this the lane-reduce structure is XLU-bound -> plain jnp.max
_MAX_BLOCK_HW = 8192          # cap lane-axis tile (keeps the in-kernel fold unroll small)
_TARGET_TILE_BYTES = 4 << 20  # ~4 MiB/buffer: ~85% of HBM roofline, safe in v5e scoped VMEM


def _neg_limit(dtype):
    dtype = jnp.dtype(dtype)
    if jnp.issubdtype(dtype, jnp.floating):
        return jnp.array(-jnp.inf, dtype)
    return jnp.array(jnp.iinfo(dtype).min, dtype)


def _sublane_pack(dtype):
    # Native sublane packing: 8 rows for 32-bit, 16 for bf16/f16, 32 for int8/fp8.
    return max(8, 32 // jnp.dtype(dtype).itemsize)


def _global_max_kernel(x_ref, o_ref, acc_ref, *, hw, block_hw, needs_mask):
    # x_ref:   (block_rows, block_hw) input tile, block_hw a multiple of 128
    # o_ref:   (block_rows, 1) output tile, resident across the k axis
    # acc_ref: (block_rows, 128) per-lane running max (VPU-only steady state)
    k = pl.program_id(1)
    nk = pl.num_programs(1)
    nfold = block_hw // _LANE
    neg = _neg_limit(acc_ref.dtype)

    @pl.when(k == 0)
    def _init():
        acc_ref[...] = jnp.full(acc_ref.shape, neg, acc_ref.dtype)

    def _accumulate(x):
        # Tree-fold the block_hw/128 lane chunks with elementwise VPU maxes:
        # no XLU work on the hot path and short dependency chains for the scheduler.
        chunks = [x[:, j * _LANE:(j + 1) * _LANE] for j in range(nfold)]
        while len(chunks) > 1:
            nxt = [jnp.maximum(chunks[i], chunks[i + 1])
                   for i in range(0, len(chunks) - 1, 2)]
            if len(chunks) % 2:
                nxt.append(chunks[-1])
            chunks = nxt
        acc_ref[...] = jnp.maximum(acc_ref[...], chunks[0])

    if needs_mask:
        # Only the last k tile can contain lanes past the true H*W extent:
        # keep the -inf masking off the steady-state path.
        @pl.when(k != nk - 1)
        def _steady():
            _accumulate(x_ref[...])

        @pl.when(k == nk - 1)
        def _tail():
            x = x_ref[...]
            col = k * block_hw + jax.lax.broadcasted_iota(jnp.int32, x.shape, 1)
            _accumulate(jnp.where(col < hw, x, neg))
    else:
        _accumulate(x_ref[...])

    @pl.when(k == nk - 1)
    def _finalize():
        # Single cross-lane (XLU) reduce + cast per row tile.
        o_ref[...] = jnp.max(acc_ref[...], axis=-1, keepdims=True).astype(o_ref.dtype)


def _choose_tiles(rows, hw, dtype, target_bytes=_TARGET_TILE_BYTES):
    """Pick (block_rows, block_hw) budgeting the PADDED VMEM footprint of one tile."""
    itemsize = jnp.dtype(dtype).itemsize
    row_align = _sublane_pack(dtype)
    hw_pad = pl.cdiv(hw, _LANE) * _LANE              # lanes actually occupied in VMEM

    # Lane-axis tile: always a multiple of 128 so the in-kernel fold is exact.
    block_hw = min(hw_pad, _MAX_BLOCK_HW)

    # Rows per tile under the padded-bytes budget, aligned to the sublane packing.
    per_row_bytes = block_hw * itemsize
    block_rows = max(row_align, (target_bytes // per_row_bytes) // row_align * row_align)

    if rows <= row_align:
        block_rows = rows                             # full extent (no alignment requirement)
    elif block_rows * 2 > rows:
        # Keep >= 2 row blocks so the "parallel" axis shards across v7x's 2 TensorCores.
        block_rows = pl.cdiv(pl.cdiv(rows, 2), row_align) * row_align

    return block_rows, block_hw, row_align


def adaptive_max_pool2d(x: jax.Array) -> jax.Array:
    """Equivalent of F.max_pool2d(x, kernel_size=(H, W)) for NCHW input -> (N, C, 1, 1)."""
    N, C, H, W = x.shape
    rows, hw = N * C, H * W
    itemsize = jnp.dtype(x.dtype).itemsize

    # Tiny feature maps (7x7, 14x14, ...) are XLU-bound under this structure (3-7x off
    # roofline per review); plain XLA reduce is the right tool there.
    if hw < _SMALL_HW_FALLBACK:
        return jnp.max(x, axis=(2, 3), keepdims=True)

    x2 = x.reshape(rows, hw)                          # free row-major reshape: H*W -> lanes

    block_rows, block_hw, row_align = _choose_tiles(rows, hw, x.dtype)
    grid = (pl.cdiv(rows, block_rows), pl.cdiv(hw, block_hw))
    needs_mask = (hw % block_hw) != 0

    # Padded, double-buffered working set -> explicit scoped-VMEM limit (safe on v5e/v6e/v7x).
    pad_rows = pl.cdiv(block_rows, row_align) * row_align
    in_tile_bytes = pad_rows * block_hw * itemsize
    acc_bytes = pad_rows * _LANE * itemsize
    out_tile_bytes = pad_rows * _LANE * itemsize      # (block_rows, 1) pads lanes to 128
    needed = 2 * in_tile_bytes + 2 * out_tile_bytes + acc_bytes
    vmem_limit = int(min(max(needed + (4 << 20), 16 << 20), 48 << 20))

    kernel = functools.partial(
        _global_max_kernel, hw=hw, block_hw=block_hw, needs_mask=needs_mask)

    out = pl.pallas_call(
        kernel,
        out_shape=jax.ShapeDtypeStruct((rows, 1), x.dtype),
        grid=grid,
        in_specs=[pl.BlockSpec((block_rows, block_hw), lambda i, k: (i, k))],
        out_specs=pl.BlockSpec((block_rows, 1), lambda i, k: (i, 0)),
        scratch_shapes=[pltpu.VMEM((block_rows, _LANE), x.dtype)],
        compiler_params=pltpu.CompilerParams(
            dimension_semantics=("parallel", "arbitrary"),
            vmem_limit_bytes=vmem_limit,
        ),
        cost_estimate=pl.CostEstimate(
            flops=rows * hw,
            transcendentals=0,
            bytes_accessed=rows * hw * itemsize + rows * itemsize,
        ),
    )(x2)

    return out.reshape(N, C, 1, 1)


def _reference(x: jax.Array) -> jax.Array:
    return jnp.max(x, axis=(2, 3), keepdims=True)


if __name__ == "__main__":
    # Primary shape implied by the module's forward (global max pool over H, W).
    x = jax.random.normal(jax.random.PRNGKey(0), (2, 4, 16, 16), dtype=jnp.float32)
    y = adaptive_max_pool2d(x)
    jax.block_until_ready(y)
    assert y.shape == (2, 4, 1, 1), y.shape
    assert jnp.allclose(y, _reference(x)), "mismatch vs reference (16x16)"

    # Tiny H*W -> small-feature-map dispatch path.
    x2 = jax.random.normal(jax.random.PRNGKey(1), (3, 5, 7, 7), dtype=jnp.float32)
    y2 = adaptive_max_pool2d(x2)
    jax.block_until_ready(y2)
    assert jnp.allclose(y2, _reference(x2)), "mismatch vs reference (7x7)"

    # Multi-step reduction axis + masked tail tile (400*400 lanes, 20 k-steps).
    x3 = jax.random.normal(jax.random.PRNGKey(2), (1, 8, 400, 400), dtype=jnp.float32)
    y3 = adaptive_max_pool2d(x3)
    jax.block_until_ready(y3)
    assert jnp.allclose(y3, _reference(x3)), "mismatch vs reference (400x400)"

    # bf16 + partial row blocks + >=2 row blocks + non-multiple-of-128 H*W mask.
    x4 = jax.random.normal(jax.random.PRNGKey(3), (3, 8, 20, 19), dtype=jnp.bfloat16)
    y4 = adaptive_max_pool2d(x4)
    jax.block_until_ready(y4)
    assert jnp.allclose(y4, _reference(x4)), "mismatch vs reference (bf16 20x19)"

    print("KERNEL_OK")
</pallas_src>

<mosaic_0001>
module attributes {stable_mosaic.version = 11 : i64} {
  func.func @_global_max_kernel(%arg0: i32, %arg1: i32, %arg2: memref<8x256xf32, #tpu.memory_space<vmem>>, %arg3: memref<8x1xf32, #tpu.memory_space<vmem>>, %arg4: memref<8x128xf32, #tpu.memory_space<vmem>>) attributes {dimension_semantics = [#tpu.dimension_semantics<parallel>, #tpu.dimension_semantics<arbitrary>], iteration_bounds = array<i64: 1, 1>, scalar_prefetch = 0 : i64, scratch_operands = 1 : i64, tpu.core_type = #tpu.core_type<tc>, window_params = [{transform_indices = @transform_0, window_bounds = array<i64: 8, 256>}, {transform_indices = @transform_1, window_bounds = array<i64: 8, 1>}]} {
    %c0_i32 = arith.constant 0 : i32
    %0 = arith.cmpi eq, %arg1, %c0_i32 : i32
    %1 = arith.extui %0 : i1 to i32
    %cst = arith.constant 0xFF800000 : f32
    %c0_i32_0 = arith.constant 0 : i32
    %2 = arith.cmpi ne, %1, %c0_i32_0 : i32
    scf.if %2 {
      %13 = vector.broadcast %cst : f32 to vector<8x128xf32>
      %c0_8 = arith.constant 0 : index
      %c0_9 = arith.constant 0 : index
      %14 = vector.load %arg4[%c0_8, %c0_9] : memref<8x128xf32, #tpu.memory_space<vmem>>, vector<8x128xf32>
      tpu.vector_store %arg4[%c0_8, %c0_9], %13 {strides = array<i32>} : memref<8x128xf32, #tpu.memory_space<vmem>>, vector<8x128xf32>,
    } else {
    }
    %c0 = arith.constant 0 : index
    %c0_1 = arith.constant 0 : index
    %3 = vector.load %arg2[%c0, %c0_1] : memref<8x256xf32, #tpu.memory_space<vmem>>, vector<8x256xf32>
    %4 = vector.extract_strided_slice %3 {offsets = [0, 0], sizes = [8, 128], strides = [1, 1]} : vector<8x256xf32> to vector<8x128xf32>
    %5 = vector.extract_strided_slice %3 {offsets = [0, 128], sizes = [8, 128], strides = [1, 1]} : vector<8x256xf32> to vector<8x128xf32>
    %6 = arith.maximumf %4, %5 : vector<8x128xf32>
    %c0_2 = arith.constant 0 : index
    %c0_3 = arith.constant 0 : index
    %7 = vector.load %arg4[%c0_2, %c0_3] : memref<8x128xf32, #tpu.memory_space<vmem>>, vector<8x128xf32>
    %8 = arith.maximumf %7, %6 : vector<8x128xf32>
    %c0_4 = arith.constant 0 : index
    %c0_5 = arith.constant 0 : index
    %9 = vector.load %arg4[%c0_4, %c0_5] : memref<8x128xf32, #tpu.memory_space<vmem>>, vector<8x128xf32>
    tpu.vector_store %arg4[%c0_4, %c0_5], %8 {strides = array<i32>} : memref<8x128xf32, #tpu.memory_space<vmem>>, vector<8x128xf32>,
    %c0_i32_6 = arith.constant 0 : i32
    %10 = arith.cmpi eq, %arg1, %c0_i32_6 : i32
    %11 = arith.extui %10 : i1 to i32
    %c0_i32_7 = arith.constant 0 : i32
    %12 = arith.cmpi ne, %11, %c0_i32_7 : i32
    scf.if %12 {
      %c0_8 = arith.constant 0 : index
      %c0_9 = arith.constant 0 : index
      %13 = vector.load %arg4[%c0_8, %c0_9] : memref<8x128xf32, #tpu.memory_space<vmem>>, vector<8x128xf32>
      %cst_10 = arith.constant dense<0xFF800000> : vector<8xf32>
      %14 = vector.multi_reduction <maximumf>, %13, %cst_10 [1] : vector<8x128xf32> to vector<8xf32>
      %15 = vector.shape_cast %14 : vector<8xf32> to vector<8x1xf32>
      %c0_11 = arith.constant 0 : index
      %c0_12 = arith.constant 0 : index
      %16 = vector.load %arg3[%c0_11, %c0_12] : memref<8x1xf32, #tpu.memory_space<vmem>>, vector<8x1xf32>
      tpu.vector_store %arg3[%c0_11, %c0_12], %15 {strides = array<i32>} : memref<8x1xf32, #tpu.memory_space<vmem>>, vector<8x1xf32>,
    } else {
    }
    return
  }
  func.func @transform_0(%arg0: i32, %arg1: i32) -> (i32, i32) {
    %c0_i32 = arith.constant 0 : i32
    return %arg0, %arg1 : i32, i32
  }
  func.func @transform_1(%arg0: i32, %arg1: i32) -> (i32, i32) {
    %c0_i32 = arith.constant 0 : i32
    %c0_i32_0 = arith.constant 0 : i32
    return %arg0, %c0_i32 : i32, i32
  }
}

</mosaic_0001>

<bundles_post_ra>
// kernel: tpu_custom_call.1
= control target key start
LH: loop header
LB: loop body
LE: loop exit
PB: predicated region body
PF: predicated region fallthrough
CT: control target
= control target key end

     0   :  { %6 = vsyncpa [#allocation4], 0  ;;  %s69_s6 = smov [#allocation3]   ;;  %s95_s0 = inlined_call_operand.hbm [shape: f32[8,256], index: 0, kind: input, shape index: {}]   ;;  %s96_s1 = inlined_call_operand.vmem [shape: f32[8,1], index: 1, kind: output, shape index: {}]  }
   0x1   :  { %s13_s7 = sshll.u32 %s69_s6, 4  ;;  %s45_s10 = scalar_lea.hbm %s95_s0, 256  ;;  %s14_s7 = int_to_ptr.vmem [resolvable:$true] %s13_s7 }
   0x2   :  { %p46_p0 = scmp.ne.s32.totalorder %s95_s0, %s45_s10  ;;  %p49_p1 = scmp.lt.u32.totalorder %s45_s10, %s95_s0 }
   0x4   :  { %p51_p2 = pnand %p49_p1, %p46_p0 }
   0x6   :  { %54 = shalt.err (!%p51_p2)
}
   0x7   :  { %s55_s15 = scalar_lea.vmem %s14_s7, 256  ;;  %p60_p4 = scmp.lt.s32.totalorder %s14_s7, %s14_s7 }
   0x8   :  { %p56_p3 = scmp.ne.s32.totalorder %s14_s7, %s55_s15  ;;  %p61_p5 = scmp.lt.s32.totalorder %s55_s15, %s55_s15 }
   0xa   :  { %p62_p6 = por %p61_p5, %p60_p4 }
   0xc   :  { %p63_p7 = pnand %p62_p6, %p56_p3 }
   0xe   :  { %66 = shalt.err (!%p63_p7)
}
   0xf   :  { %16 = dma.hbm_to_vmem [thread:$0]  %s95_s0, 256, %s14_s7, [#allocation4]  }
  0x10   :  { %67 = dma.done.wait [#allocation4], 256  }
  0x11   :  { %68 = vsyncadd [#allocation4], 4294967040  ;;  %v25_v0 = vld [vmem:[#allocation3] sm:$0xff]  ;;  %v26_v1 = vld [vmem:[#allocation3 + $0x8] sm:$0xff]  ;;  %vm37_vm0 = vcmask 7168  }
  0x12   :  { %v27_v2 = vmax.f32 %v25_v0, %v26_v1 }
  0x14   :  { %35 = vmax.xlane.f32.xlu0 %v27_v2 }
  0xa1   :  { %v36_v3 = vpop.xlane.xlu0 %35 }
  0xa2   :  { %38 = vst.msk [vmem:[%s96_s1] sm:$0xff] %vm37_vm0, %v36_v3 }
  0xa3   :  { %43 = vsyncpa [#allocation4], 1 }

</bundles_post_ra>
